<compile_context>
chip_gen: v6e
topology: v6e:2x2x1
jax: 0.10.0
libtpu: 0.0.40
codegen_flags: <defaults>
</compile_context>

<pallas_src>
import functools

import jax
import jax.numpy as jnp
from jax.experimental import pallas as pl
from jax.experimental.pallas import tpu as pltpu

LANE = 128


def _round_up(n, m):
    return ((n + m - 1) // m) * m


def _mlp_kernel(x_ref, w1_ref, b1_ref, w2_ref, b2_ref, w3_ref, b3_ref, o_ref):
    # x arrives as f32 (tm, K=41); cast to bf16 for the MXU, accumulate in f32.
    x = x_ref[...].astype(jnp.bfloat16)

    # Layer 1: Linear(K -> H) + ReLU (bias-add/ReLU in f32; VPU-safe on v5e).
    h1 = jnp.dot(x, w1_ref[...], preferred_element_type=jnp.float32)
    h1 = jnp.maximum(h1 + b1_ref[...], 0.0)

    # Layer 2: Linear(H -> H) + ReLU.
    h2 = jnp.dot(h1.astype(jnp.bfloat16), w2_ref[...],
                 preferred_element_type=jnp.float32)
    h2 = jnp.maximum(h2 + b2_ref[...], 0.0)

    # Classifier head: Linear(H -> C). Lane-dense bf16 store (C padded to 128).
    logits = jnp.dot(h2.astype(jnp.bfloat16), w3_ref[...],
                     preferred_element_type=jnp.float32)
    o_ref[...] = (logits + b3_ref[...]).astype(o_ref.dtype)


def prepare_params(params):
    """One-time pad + bf16 cast of the weights/biases (cache the result).

    Weights are stored [in_features, out_features] so the kernel computes
    y = x @ W + b (== PyTorch's x @ W.T + b with W of shape [out, in]).
    K (input_dim) is left unpadded so x can be streamed unpadded; only the
    output feature dims are padded to the 128-lane width. Zero padding keeps
    the real columns exact.
    """
    w1, b1, w2, b2, w3, b3 = params
    K, H = w1.shape
    C = w3.shape[1]
    H_pad = _round_up(H, LANE)
    C_pad = _round_up(C, LANE)

    bf16, f32 = jnp.bfloat16, jnp.float32
    w1p = jnp.zeros((K, H_pad), bf16).at[:, :H].set(w1.astype(bf16))
    w2p = jnp.zeros((H_pad, H_pad), bf16).at[:H, :H].set(w2.astype(bf16))
    w3p = jnp.zeros((H_pad, C_pad), bf16).at[:H, :C].set(w3.astype(bf16))
    b1p = jnp.zeros((1, H_pad), f32).at[:, :H].set(b1.reshape(1, -1).astype(f32))
    b2p = jnp.zeros((1, H_pad), f32).at[:, :H].set(b2.reshape(1, -1).astype(f32))
    b3p = jnp.zeros((1, C_pad), f32).at[:, :C].set(b3.reshape(1, -1).astype(f32))
    return (w1p, b1p, w2p, b2p, w3p, b3p)


@functools.partial(
    jax.jit, static_argnames=("num_classes", "tile_m", "single_step_max_rows"))
def simple_classifier(x, prepared_params, *, num_classes,
                      tile_m=512, single_step_max_rows=512):
    """Forward pass matching PyTorch SimpleClassifier. Returns (B, num_classes) f32."""
    w1p, b1p, w2p, b2p, w3p, b3p = prepared_params
    B, K = x.shape
    assert K == w1p.shape[0], "x feature dim must match prepared w1"
    H_pad = w1p.shape[1]
    C_pad = w3p.shape[1]

    if B <= single_step_max_rows:
        # Single grid step: block == full array, no batch padding, no per-step
        # overhead. (Splitting a tiny batch is pure serial-loop overhead.)
        tm = B
        B_pad = B
    else:
        # Large batch: big tiles (grid-step overhead amortized), multiple of 16
        # (packed bf16 output sublanes), and at least 2 grid steps so the
        # "parallel" batch axis can shard across v7x's two TensorCores.
        tm = min(2048, max(16, _round_up(tile_m, 16)))
        tm = min(tm, _round_up(pl.cdiv(B, 2), 16))
        B_pad = _round_up(B, tm)
    grid = (B_pad // tm,)

    xp = x if B_pad == B else jnp.pad(x, ((0, B_pad - B), (0, 0)))

    # Constant index_map -> weights/biases stay VMEM-resident across grid steps.
    def const(arr):
        return pl.BlockSpec(arr.shape, lambda i: (0,) * arr.ndim)

    flops = 2 * B_pad * (K * H_pad + H_pad * H_pad + H_pad * C_pad)
    bytes_accessed = (
        xp.size * 4
        + (w1p.size + w2p.size + w3p.size) * 2
        + (b1p.size + b2p.size + b3p.size) * 4
        + B_pad * C_pad * 2
    )

    out_padded = pl.pallas_call(
        _mlp_kernel,
        out_shape=jax.ShapeDtypeStruct((B_pad, C_pad), jnp.bfloat16),
        grid=grid,
        in_specs=[
            pl.BlockSpec((tm, K), lambda i: (i, 0)),   # last dim == full dim (41)
            const(w1p), const(b1p),
            const(w2p), const(b2p),
            const(w3p), const(b3p),
        ],
        out_specs=pl.BlockSpec((tm, C_pad), lambda i: (i, 0)),
        compiler_params=pltpu.CompilerParams(
            dimension_semantics=("parallel",),   # both TCs on v7x when grid > 1
        ),
        cost_estimate=pl.CostEstimate(
            flops=flops, transcendentals=0, bytes_accessed=bytes_accessed),
    )(xp, w1p, b1p, w2p, b2p, w3p, b3p)

    # Padded logit columns (>= num_classes) are 0.0 (NOT -inf); slice them off
    # before any softmax/argmax. TODO(synk): fuse the downstream consumer
    # (argmax / loss) into the kernel to avoid re-reading the padded slab.
    return out_padded[:B, :num_classes].astype(jnp.float32)


def init_params(key, input_dim, hidden_dim, num_classes):
    """Deterministic synthetic parameter init (shapes match the PyTorch module)."""
    k1, k2, k3, k4, k5, k6 = jax.random.split(key, 6)
    # Stored as [in, out] so the kernel does x @ W + b (== PyTorch x @ W.T + b).
    w1 = jax.random.normal(k1, (input_dim, hidden_dim), jnp.float32) * 0.1
    b1 = jax.random.normal(k2, (1, hidden_dim), jnp.float32) * 0.01
    w2 = jax.random.normal(k3, (hidden_dim, hidden_dim), jnp.float32) * 0.1
    b2 = jax.random.normal(k4, (1, hidden_dim), jnp.float32) * 0.01
    w3 = jax.random.normal(k5, (hidden_dim, num_classes), jnp.float32) * 0.1
    b3 = jax.random.normal(k6, (1, num_classes), jnp.float32) * 0.01
    return (w1, b1, w2, b2, w3, b3)


def reference_forward(x, params):
    """Pure-JAX reference mirroring the kernel's bf16-operand / f32-accumulate math."""
    w1, b1, w2, b2, w3, b3 = params
    bf = jnp.bfloat16
    h1 = jnp.dot(x.astype(bf), w1.astype(bf), preferred_element_type=jnp.float32) + b1
    h1 = jnp.maximum(h1, 0.0)
    h2 = jnp.dot(h1.astype(bf), w2.astype(bf), preferred_element_type=jnp.float32) + b2
    h2 = jnp.maximum(h2, 0.0)
    return jnp.dot(h2.astype(bf), w3.astype(bf), preferred_element_type=jnp.float32) + b3


if __name__ == "__main__":
    input_dim = 41      # matches the PyTorch script's input_dim
    hidden_dim = 64     # FeatureExtractor default hidden_dim
    num_classes = 5
    batch = 8

    key = jax.random.PRNGKey(0)
    kx, kp = jax.random.split(key)
    x = jax.random.normal(kx, (batch, input_dim), jnp.float32)
    params = init_params(kp, input_dim, hidden_dim, num_classes)

    # One-time weight preparation (hoisted out of the per-call path).
    prepared = prepare_params(params)

    # Single-step path (grid=(1,), no batch padding).
    logits = jax.block_until_ready(
        simple_classifier(x, prepared, num_classes=num_classes))
    ref = reference_forward(x, params)
    assert logits.shape == (batch, num_classes)
    assert jnp.allclose(logits, ref, atol=2e-2, rtol=2e-2), "mismatch vs reference"

    # Multi-tile path (grid=(2,)): small knobs force the tiled branch so the
    # batch grid axis + VMEM-resident weight BlockSpecs are exercised cheaply.
    x2 = jax.random.normal(jax.random.PRNGKey(1), (32, input_dim), jnp.float32)
    logits2 = jax.block_until_ready(
        simple_classifier(x2, prepared, num_classes=num_classes,
                          tile_m=16, single_step_max_rows=8))
    ref2 = reference_forward(x2, params)
    assert logits2.shape == (32, num_classes)
    assert jnp.allclose(logits2, ref2, atol=2e-2, rtol=2e-2), "mismatch vs reference (tiled)"

    print("KERNEL_OK")
</pallas_src>

<mosaic_0001>
module attributes {stable_mosaic.version = 11 : i64} {
  func.func @_mlp_kernel(%arg0: i32, %arg1: memref<8x41xf32, #tpu.memory_space<vmem>>, %arg2: memref<41x128xbf16, #tpu.memory_space<vmem>>, %arg3: memref<1x128xf32, #tpu.memory_space<vmem>>, %arg4: memref<128x128xbf16, #tpu.memory_space<vmem>>, %arg5: memref<1x128xf32, #tpu.memory_space<vmem>>, %arg6: memref<128x128xbf16, #tpu.memory_space<vmem>>, %arg7: memref<1x128xf32, #tpu.memory_space<vmem>>, %arg8: memref<8x128xbf16, #tpu.memory_space<vmem>>) attributes {dimension_semantics = [#tpu.dimension_semantics<parallel>], iteration_bounds = array<i64: 1>, scalar_prefetch = 0 : i64, scratch_operands = 0 : i64, tpu.core_type = #tpu.core_type<tc>, window_params = [{transform_indices = @transform_0, window_bounds = array<i64: 8, 41>}, {pipeline_mode = #tpu.pipeline_mode<synchronous>, transform_indices = @transform_1, window_bounds = array<i64: 41, 128>}, {pipeline_mode = #tpu.pipeline_mode<synchronous>, transform_indices = @transform_2, window_bounds = array<i64: 1, 128>}, {pipeline_mode = #tpu.pipeline_mode<synchronous>, transform_indices = @transform_3, window_bounds = array<i64: 128, 128>}, {pipeline_mode = #tpu.pipeline_mode<synchronous>, transform_indices = @transform_4, window_bounds = array<i64: 1, 128>}, {pipeline_mode = #tpu.pipeline_mode<synchronous>, transform_indices = @transform_5, window_bounds = array<i64: 128, 128>}, {pipeline_mode = #tpu.pipeline_mode<synchronous>, transform_indices = @transform_6, window_bounds = array<i64: 1, 128>}, {transform_indices = @transform_7, window_bounds = array<i64: 8, 128>}]} {
    %c0 = arith.constant 0 : index
    %c0_0 = arith.constant 0 : index
    %0 = vector.load %arg1[%c0, %c0_0] : memref<8x41xf32, #tpu.memory_space<vmem>>, vector<8x41xf32>
    %1 = arith.truncf %0 : vector<8x41xf32> to vector<8x41xbf16>
    %c0_1 = arith.constant 0 : index
    %c0_2 = arith.constant 0 : index
    %2 = vector.load %arg2[%c0_1, %c0_2] : memref<41x128xbf16, #tpu.memory_space<vmem>>, vector<41x128xbf16>
    %cst = arith.constant dense<0.000000e+00> : vector<8x128xf32>
    %3 = tpu.matmul %1, %2, %cst {dimension_numbers = #tpu.dot_dimension_numbers<[1], [0], [0], [1], [0, 0, 1, 1], [], []>} : vector<8x41xbf16>, vector<41x128xbf16>, vector<8x128xf32> -> vector<8x128xf32>
    %c0_3 = arith.constant 0 : index
    %c0_4 = arith.constant 0 : index
    %4 = vector.load %arg3[%c0_3, %c0_4] : memref<1x128xf32, #tpu.memory_space<vmem>>, vector<1x128xf32>
    %5 = vector.broadcast %4 : vector<1x128xf32> to vector<8x128xf32>
    %6 = arith.addf %3, %5 : vector<8x128xf32>
    %cst_5 = arith.constant 0.000000e+00 : f32
    %7 = vector.broadcast %cst_5 : f32 to vector<8x128xf32>
    %8 = arith.maximumf %6, %7 : vector<8x128xf32>
    %9 = arith.truncf %8 : vector<8x128xf32> to vector<8x128xbf16>
    %c0_6 = arith.constant 0 : index
    %c0_7 = arith.constant 0 : index
    %10 = vector.load %arg4[%c0_6, %c0_7] : memref<128x128xbf16, #tpu.memory_space<vmem>>, vector<128x128xbf16>
    %cst_8 = arith.constant dense<0.000000e+00> : vector<8x128xf32>
    %11 = tpu.matmul %9, %10, %cst_8 {dimension_numbers = #tpu.dot_dimension_numbers<[1], [0], [0], [1], [0, 0, 1, 1], [], []>} : vector<8x128xbf16>, vector<128x128xbf16>, vector<8x128xf32> -> vector<8x128xf32>
    %c0_9 = arith.constant 0 : index
    %c0_10 = arith.constant 0 : index
    %12 = vector.load %arg5[%c0_9, %c0_10] : memref<1x128xf32, #tpu.memory_space<vmem>>, vector<1x128xf32>
    %13 = vector.broadcast %12 : vector<1x128xf32> to vector<8x128xf32>
    %14 = arith.addf %11, %13 : vector<8x128xf32>
    %cst_11 = arith.constant 0.000000e+00 : f32
    %15 = vector.broadcast %cst_11 : f32 to vector<8x128xf32>
    %16 = arith.maximumf %14, %15 : vector<8x128xf32>
    %17 = arith.truncf %16 : vector<8x128xf32> to vector<8x128xbf16>
    %c0_12 = arith.constant 0 : index
    %c0_13 = arith.constant 0 : index
    %18 = vector.load %arg6[%c0_12, %c0_13] : memref<128x128xbf16, #tpu.memory_space<vmem>>, vector<128x128xbf16>
    %cst_14 = arith.constant dense<0.000000e+00> : vector<8x128xf32>
    %19 = tpu.matmul %17, %18, %cst_14 {dimension_numbers = #tpu.dot_dimension_numbers<[1], [0], [0], [1], [0, 0, 1, 1], [], []>} : vector<8x128xbf16>, vector<128x128xbf16>, vector<8x128xf32> -> vector<8x128xf32>
    %c0_15 = arith.constant 0 : index
    %c0_16 = arith.constant 0 : index
    %20 = vector.load %arg7[%c0_15, %c0_16] : memref<1x128xf32, #tpu.memory_space<vmem>>, vector<1x128xf32>
    %21 = vector.broadcast %20 : vector<1x128xf32> to vector<8x128xf32>
    %22 = arith.addf %19, %21 : vector<8x128xf32>
    %23 = arith.truncf %22 : vector<8x128xf32> to vector<8x128xbf16>
    %c0_17 = arith.constant 0 : index
    %c0_18 = arith.constant 0 : index
    %24 = vector.load %arg8[%c0_17, %c0_18] : memref<8x128xbf16, #tpu.memory_space<vmem>>, vector<8x128xbf16>
    tpu.vector_store %arg8[%c0_17, %c0_18], %23 {strides = array<i32>} : memref<8x128xbf16, #tpu.memory_space<vmem>>, vector<8x128xbf16>,
    return
  }
  func.func @transform_0(%arg0: i32) -> (i32, i32) {
    %c0_i32 = arith.constant 0 : i32
    %c0_i32_0 = arith.constant 0 : i32
    return %arg0, %c0_i32 : i32, i32
  }
  func.func @transform_1(%arg0: i32) -> (i32, i32) {
    %c0_i32 = arith.constant 0 : i32
    %c0_i32_0 = arith.constant 0 : i32
    %c0_i32_1 = arith.constant 0 : i32
    return %c0_i32, %c0_i32_0 : i32, i32
  }
  func.func @transform_2(%arg0: i32) -> (i32, i32) {
    %c0_i32 = arith.constant 0 : i32
    %c0_i32_0 = arith.constant 0 : i32
    %c0_i32_1 = arith.constant 0 : i32
    return %c0_i32, %c0_i32_0 : i32, i32
  }
  func.func @transform_3(%arg0: i32) -> (i32, i32) {
    %c0_i32 = arith.constant 0 : i32
    %c0_i32_0 = arith.constant 0 : i32
    %c0_i32_1 = arith.constant 0 : i32
    return %c0_i32, %c0_i32_0 : i32, i32
  }
  func.func @transform_4(%arg0: i32) -> (i32, i32) {
    %c0_i32 = arith.constant 0 : i32
    %c0_i32_0 = arith.constant 0 : i32
    %c0_i32_1 = arith.constant 0 : i32
    return %c0_i32, %c0_i32_0 : i32, i32
  }
  func.func @transform_5(%arg0: i32) -> (i32, i32) {
    %c0_i32 = arith.constant 0 : i32
    %c0_i32_0 = arith.constant 0 : i32
    %c0_i32_1 = arith.constant 0 : i32
    return %c0_i32, %c0_i32_0 : i32, i32
  }
  func.func @transform_6(%arg0: i32) -> (i32, i32) {
    %c0_i32 = arith.constant 0 : i32
    %c0_i32_0 = arith.constant 0 : i32
    %c0_i32_1 = arith.constant 0 : i32
    return %c0_i32, %c0_i32_0 : i32, i32
  }
  func.func @transform_7(%arg0: i32) -> (i32, i32) {
    %c0_i32 = arith.constant 0 : i32
    %c0_i32_0 = arith.constant 0 : i32
    return %arg0, %c0_i32 : i32, i32
  }
}

</mosaic_0001>

<bundles_post_ra>
// kernel: simple_classifier.1
= control target key start
LH: loop header
LB: loop body
LE: loop exit
PB: predicated region body
PF: predicated region fallthrough
CT: control target
= control target key end

     0   :  { %12 = vsyncpa [#allocation3], 0  ;;  %s714_s0 = inlined_call_operand.hbm [shape: f32[8,41], index: 0, kind: input, shape index: {}]   ;;  %s715_s1 = inlined_call_operand.hbm [shape: bf16[41,128], index: 1, kind: input, shape index: {}]   ;;  %s716_s2 = inlined_call_operand.vmem [shape: f32[1,128], index: 2, kind: input, shape index: {}]   ;;  %s717_s3 = inlined_call_operand.hbm [shape: bf16[128,128], index: 3, kind: input, shape index: {}]   ;;  %s718_s4 = inlined_call_operand.vmem [shape: f32[1,128], index: 4, kind: input, shape index: {}]   ;;  %s719_s5 = inlined_call_operand.hbm [shape: bf16[128,128], index: 5, kind: input, shape index: {}]   ;;  %s720_s6 = inlined_call_operand.vmem [shape: f32[1,128], index: 6, kind: input, shape index: {}]   ;;  %s721_s7 = inlined_call_operand.vmem [shape: bf16[8,128], index: 7, kind: output, shape index: {}]  }
   0x1   :  { %13 = vsyncpa [#allocation5], 0 }
   0x2   :  { %14 = vsyncpa [#allocation8], 0  ;;  %s607_s24 = smov [#allocation4]  }
   0x3   :  { %s30_s25 = sshll.u32 %s607_s24, 4  ;;  %s31_s25 = int_to_ptr.vmem [resolvable:$true] %s30_s25 }
   0x4   :  { %s529_s26 = scalar_lea.vmem %s31_s25, 384  ;;  %p534_p1 = scmp.lt.s32.totalorder %s31_s25, %s31_s25 }
   0x5   :  { %p530_p0 = scmp.ne.s32.totalorder %s31_s25, %s529_s26  ;;  %p535_p2 = scmp.lt.s32.totalorder %s529_s26, %s529_s26 }
   0x7   :  { %p536_p3 = por %p535_p2, %p534_p1 }
   0x9   :  { %p537_p4 = pnand %p536_p3, %p530_p0 }
   0xb   :  { %540 = shalt.err (!%p537_p4)
}
   0xc   :  { %s608_s27 = smov 64   ;;  %s609_s28 = smov 4  }
   0xd   :  { %36 = dma.hbm_to_vmem [thread:$0]  %s715_s1, 384, %s31_s25, [#allocation5], %s608_s27, %s608_s27, %s609_s28  }
   0xe   :  { %s610_s8 = smov [#allocation2]   ;;  %s611_s10 = smov [#allocation6]  }
   0xf   :  { %s21_s9 = sshll.u32 %s610_s8, 4  ;;  %s44_s11 = sshll.u32 %s611_s10, 4  ;;  %s22_s9 = int_to_ptr.vmem [resolvable:$true] %s21_s9  ;;  %s45_s11 = int_to_ptr.vmem [resolvable:$true] %s44_s11 }
  0x10   :  { %s549_s12 = scalar_lea.vmem %s22_s9, 128  ;;  %p554_p6 = scmp.lt.s32.totalorder %s22_s9, %s22_s9 }
  0x11   :  { %p550_p5 = scmp.ne.s32.totalorder %s22_s9, %s549_s12  ;;  %p555_p7 = scmp.lt.s32.totalorder %s549_s12, %s549_s12 }
  0x13   :  { %p556_p8 = por %p555_p7, %p554_p6 }
  0x15   :  { %p557_p9 = pnand %p556_p8, %p550_p5 }
  0x17   :  { %560 = shalt.err (!%p557_p9)
}
  0x18   :  { %24 = dma.hbm_to_vmem [thread:$0]  %s714_s0, 128, %s22_s9, [#allocation3]  }
  0x19   :  { %s569_s15 = scalar_lea.vmem %s45_s11, 1024  ;;  %p574_p11 = scmp.lt.s32.totalorder %s45_s11, %s45_s11 }
  0x1a   :  { %p570_p10 = scmp.ne.s32.totalorder %s45_s11, %s569_s15  ;;  %p575_p12 = scmp.lt.s32.totalorder %s569_s15, %s569_s15 }
  0x1c   :  { %p576_p13 = por %p575_p12, %p574_p11 }
  0x1e   :  { %p577_p0 = pnand %p576_p13, %p570_p10 }
  0x20   :  { %580 = shalt.err (!%p577_p0)
}
  0x21   :  { %50 = dma.hbm_to_vmem [thread:$0]  %s717_s3, 1024, %s45_s11, [#allocation5], %s608_s27, %s608_s27, %s609_s28  }
  0x22   :  { %s612_s17 = smov [#allocation7]  }
  0x23   :  { %s58_s18 = sshll.u32 %s612_s17, 4  ;;  %s59_s18 = int_to_ptr.vmem [resolvable:$true] %s58_s18 }
  0x24   :  { %s589_s19 = scalar_lea.vmem %s59_s18, 1024  ;;  %p594_p2 = scmp.lt.s32.totalorder %s59_s18, %s59_s18 }
  0x25   :  { %p590_p1 = scmp.ne.s32.totalorder %s59_s18, %s589_s19  ;;  %p595_p3 = scmp.lt.s32.totalorder %s589_s19, %s589_s19 }
  0x27   :  { %p596_p4 = por %p595_p3, %p594_p2 }
  0x29   :  { %p597_p5 = pnand %p596_p4, %p590_p1 }
  0x2b   :  { %600 = shalt.err (!%p597_p5)
}
  0x2c   :  { %64 = dma.hbm_to_vmem [thread:$0]  %s719_s5, 1024, %s59_s18, [#allocation8], %s608_s27, %s608_s27, %s609_s28  }
  0x2d   :  { %601 = dma.done.wait [#allocation3], 128  }
  0x2e   :  { %602 = vsyncadd [#allocation3], 4294967168 }
  0x2f   :  { %603 = dma.done.wait [#allocation5], 1408  }
  0x30   :  { %604 = vsyncadd [#allocation5], 4294965888 }
  0x31   :  { %605 = dma.done.wait [#allocation8], 1024  }
  0x32   :  { %606 = vsyncadd [#allocation8], 4294966272  ;;  %vm116_vm0 = vcmask 1043456   ;;  %v613_v0 = vmov 0.0   ;;  %vm614_vm1 = vmmov 0   ;;  %vm117_vm2 = vcmask 1044480  }
  0x33   :  { %443 = vmatprep.subr.bf16.mxu0 %v613_v0  ;;  %453 = vmatprep.subr.bf16.mxu1 %v613_v0  ;;  %v615_v1 = vmov 65535   ;;  %v502_v4 = vld [vmem:[#allocation4 + $0x10] sm:$0x1f]   ;;  %v503_v6 = vld [vmem:[#allocation4 + $0x8] sm:$0xff]   ;;  %v504_v9 = vld [vmem:[#allocation4] sm:$0xff]   ;;  %vm112_vm3 = vcmask 334848  }
  0x34   :  { %449 = vmatprep.mubr.msk.bf16.mxu0 %vm614_vm1, %v613_v0  ;;  %469 = vmatprep.mubr.msk.bf16.mxu1 %vm614_vm1, %v613_v0  ;;  %v118_v2 = vsel %vm116_vm0, 4294967295, %v615_v1  ;;  %v505_v7 = vld [vmem:[#allocation6 + $0x38] sm:$0xff]   ;;  %v506_v8 = vld [vmem:[#allocation6 + $0x30] sm:$0xff]   ;;  %v80_v10 = vld [vmem:[#allocation2] sm:$0xff] }
  0x35   :  { %v119_v3 = vsel %vm117_vm2, %v118_v2, 0  ;;  %454 = vmatpush3.bf16.msra.mxu1 %v505_v7  ;;  %v507_v11 = vld [vmem:[#allocation6 + $0x28] sm:$0xff]   ;;  %v81_v12 = vpack.c.bf16 %v80_v10, %v80_v10  ;;  %v508_v13 = vld [vmem:[#allocation6 + $0x20] sm:$0xff]   ;;  %v509_v14 = vld [vmem:[#allocation6 + $0x18] sm:$0xff]  }
  0x36   :  { %v121_v5 = vand.u32 %v502_v4, %v119_v3  ;;  %455 = vmatprep.subr.bf16.mxu1 %v613_v0  ;;  %v510_v15 = vld [vmem:[#allocation6 + $0x10] sm:$0xff]   ;;  %v511_v16 = vld [vmem:[#allocation6 + $0x8] sm:$0xff]   ;;  %v512_v17 = vld [vmem:[#allocation6] sm:$0xff]  }
  0x37   :  { %v513_v18 = vld [vmem:[#allocation7 + $0x38] sm:$0xff]   ;;  %v514_v19 = vld [vmem:[#allocation7 + $0x30] sm:$0xff]   ;;  %v515_v20 = vld [vmem:[#allocation7 + $0x28] sm:$0xff]  }
  0x38   :  { %444 = vmatpush3.bf16.msra.mxu0 %v121_v5  ;;  %v516_v21 = vld [vmem:[#allocation7 + $0x20] sm:$0xff]   ;;  %v517_v22 = vld [vmem:[#allocation7 + $0x18] sm:$0xff]   ;;  %v518_v23 = vld [vmem:[#allocation7 + $0x10] sm:$0xff]  }
  0x39   :  { %445 = vmatprep.subr.bf16.mxu0 %v613_v0  ;;  %456 = vmatpush3.bf16.msra.mxu1 %v506_v8  ;;  %v398_v24 = vld [vmem:[%s716_s2] ss:$0 sm:$0xff]  ;;  %v519_v32 = vld [vmem:[#allocation7 + $0x8] sm:$0xff]  }
  0x3a   :  { %457 = vmatprep.subr.bf16.mxu1 %v613_v0  ;;  %v520_v33 = vld [vmem:[#allocation7] sm:$0xff]  }
  0x3b   :  { %v403_v34 = vld [vmem:[%s718_s4] ss:$0 sm:$0xff] }
  0x3c   :  { %446 = vmatpush3.bf16.msra.mxu0 %v503_v6  ;;  %v412_v42 = vld [vmem:[%s720_s6] ss:$0 sm:$0xff] }
  0x3d   :  { %447 = vmatprep.subr.bf16.mxu0 %v613_v0  ;;  %458 = vmatpush3.bf16.msra.mxu1 %v507_v11 }
  0x3e   :  { %459 = vmatprep.subr.bf16.mxu1 %v613_v0 }
  0x40   :  { %448 = vmatpush3.bf16.msra.mxu0 %v504_v9 }
  0x41   :  { %473 = vmatprep.subr.bf16.mxu0 %v613_v0  ;;  %460 = vmatpush3.bf16.msra.mxu1 %v508_v13 }
  0x42   :  { %461 = vmatprep.subr.bf16.mxu1 %v613_v0 }
  0x43   :  { %450 = vmatmul.mubr.msk.bf16.vlgmr.msra.gmra.mxu0 %vm112_vm3, %v81_v12 }
  0x44   :  { %489 = vmatprep.mubr.msk.bf16.mxu0 %vm614_vm1, %v613_v0  ;;  %474 = vmatpush3.bf16.msra.mxu0 %v513_v18 }
  0x45   :  { %462 = vmatpush3.bf16.msra.mxu1 %v509_v14  ;;  %475 = vmatprep.subr.bf16.mxu0 %v613_v0 }
  0x46   :  { %463 = vmatprep.subr.bf16.mxu1 %v613_v0 }
  0x48   :  { %476 = vmatpush3.bf16.msra.mxu0 %v514_v19 }
  0x49   :  { %464 = vmatpush3.bf16.msra.mxu1 %v510_v15  ;;  %477 = vmatprep.subr.bf16.mxu0 %v613_v0 }
  0x4a   :  { %465 = vmatprep.subr.bf16.mxu1 %v613_v0 }
  0x4c   :  { %478 = vmatpush3.bf16.msra.mxu0 %v515_v20 }
  0x4d   :  { %466 = vmatpush3.bf16.msra.mxu1 %v511_v16  ;;  %479 = vmatprep.subr.bf16.mxu0 %v613_v0 }
  0x4e   :  { %467 = vmatprep.subr.bf16.mxu1 %v613_v0 }
  0x50   :  { %480 = vmatpush3.bf16.msra.mxu0 %v516_v21 }
  0x51   :  { %468 = vmatpush3.bf16.msra.mxu1 %v512_v17  ;;  %481 = vmatprep.subr.bf16.mxu0 %v613_v0 }
  0x54   :  { %482 = vmatpush3.bf16.msra.mxu0 %v517_v22 }
  0x55   :  { %483 = vmatprep.subr.bf16.mxu0 %v613_v0 }
  0x58   :  { %484 = vmatpush3.bf16.msra.mxu0 %v518_v23 }
  0x59   :  { %485 = vmatprep.subr.bf16.mxu0 %v613_v0 }
  0x5c   :  { %486 = vmatpush3.bf16.msra.mxu0 %v519_v32 }
  0x5d   :  { %487 = vmatprep.subr.bf16.mxu0 %v613_v0 }
  0x60   :  { %488 = vmatpush3.bf16.msra.mxu0 %v520_v33 }
 0x103   :  { %v157_v25 = vpop.f32.mrf.mxu0 }
 0x104   :  { %v158_v26 = vadd.f32 %v398_v24, %v157_v25 }
 0x105   :  { %v451_v27 = vpop.f32.mrf.mxu0 }
 0x106   :  { %v163_v28 = vmax.f32 %v158_v26, 0.0 }
 0x107   :  { %v160_v29 = vpop.f32.mrf.mxu0 }
 0x108   :  { %v164_v30 = vpack.c.bf16 %v163_v28, %v163_v28 }
 0x109   :  { %v452_v31 = vpop.f32.mrf.mxu0 }
 0x10a   :  { %470 = vmatmul.mubr.bf16.vlgmr.msra.gmra.mxu1 %v164_v30 }
 0x1ca   :  { %v270_v35 = vpop.f32.mrf.mxu1 }
 0x1cb   :  { %v271_v36 = vadd.f32 %v403_v34, %v270_v35 }
 0x1cc   :  { %v471_v37 = vpop.f32.mrf.mxu1 }
 0x1cd   :  { %v276_v38 = vmax.f32 %v271_v36, 0.0 }
 0x1ce   :  { %v273_v39 = vpop.f32.mrf.mxu1 }
 0x1cf   :  { %v277_v40 = vpack.c.bf16 %v276_v38, %v276_v38 }
 0x1d0   :  { %v472_v41 = vpop.f32.mrf.mxu1 }
 0x1d1   :  { %490 = vmatmul.mubr.bf16.vlgmr.msra.gmra.mxu0 %v277_v40 }
 0x291   :  { %v383_v43 = vpop.f32.mrf.mxu0 }
 0x292   :  { %v384_v44 = vadd.f32 %v412_v42, %v383_v43 }
 0x293   :  { %v491_v45 = vpop.f32.mrf.mxu0 }
 0x294   :  { %v389_v46 = vpack.c.bf16 %v384_v44, %v384_v44 }
 0x295   :  { %v386_v47 = vpop.f32.mrf.mxu0 }
 0x296   :  { %390 = vst [vmem:[%s721_s7] sm:$0xf] %v389_v46 }
 0x297   :  { %v492_v48 = vpop.f32.mrf.mxu0 }
 0x298   :  { %395 = vsyncpa [#allocation3], 1 }
 0x299   :  { %396 = vsyncpa [#allocation5], 1 }
 0x29a   :  { %397 = vsyncpa [#allocation8], 1 }

</bundles_post_ra>
